<compile_context>
chip_gen: v7x
topology: tpu7x:2x2x1
jax: 0.10.0
libtpu: 0.0.40
codegen_flags: <defaults>
</compile_context>

<pallas_src>
import functools

import jax
import jax.numpy as jnp
from jax.experimental import pallas as pl
from jax.experimental.pallas import tpu as pltpu


def _round_up(x, m):
    return ((x + m - 1) // m) * m


def _cdiv(a, b):
    return (a + b - 1) // b


# ---------------------------------------------------------------------------
# Generation-aware budgets
# ---------------------------------------------------------------------------
def _tpu_budgets():
    """Returns (target_input_block_bytes, vmem_limit_bytes, prefer_multi_block)."""
    vmem_bytes = None
    try:
        info = pltpu.get_tpu_info()
        vmem_bytes = getattr(info, "vmem_capacity_bytes", None)
    except Exception:
        vmem_bytes = None
    if not vmem_bytes:
        vmem_bytes = 64 * 1024 * 1024  # assume the tightest (v7x-class) budget
    if vmem_bytes <= 64 * 1024 * 1024:
        # v7x-class: 64 MiB VMEM per TC, 2 TCs/chip -> modest blocks, and make
        # sure the parallel grid axis has >= 2 blocks so both cores get work.
        return 2 * 1024 * 1024, 32 * 1024 * 1024, True
    # v5e / v6e: 128 MiB VMEM, single TC -> larger slabs amortise the
    # ~0.35us/grid-step overhead (512-1024 lane tiles ~85% of HBM roofline).
    return 6 * 1024 * 1024, 64 * 1024 * 1024, False


# ---------------------------------------------------------------------------
# Kernels
# ---------------------------------------------------------------------------
def _grad_flat_kernel(x_ref, t_ref, wx_ref, wy_ref, out_ref, *,
                      shift_x, shift_y, nc_total, rows, needs_row_mask):
    # One (rows, H*W) slab of image-channels per grid step.  Inputs stay in
    # their storage dtype for the DMA and are cast to f32 on-chip.
    d = x_ref[...].astype(jnp.float32) - t_ref[...].astype(jnp.float32)

    # Forward neighbours along the flattened (lane) pixel axis (XLU rotates).
    d_right = pltpu.roll(d, shift_x, 1) if shift_x else d   # d[:, p + 1]
    d_below = pltpu.roll(d, shift_y, 1) if shift_y else d   # d[:, p + W]

    # Boundary masks (last column for dx, last row for dy) precomputed outside.
    vals = (jnp.abs(d_right - d) * wx_ref[...]
            + jnp.abs(d_below - d) * wy_ref[...])

    if needs_row_mask:
        # Ragged last NC block: zero out-of-range rows with a select (not a
        # multiply) so stale VMEM NaNs in the unread tail cannot leak in.
        row = (jax.lax.broadcasted_iota(jnp.int32, vals.shape, 0)
               + pl.program_id(0) * rows)
        vals = jnp.where(row < nc_total, vals, 0.0)

    out_ref[...] = jnp.sum(vals).reshape(1, 1, 1)


def _grad_htiled_kernel(x_ref, t_ref, xh_ref, th_ref, out_ref, *,
                        H, W, NC, th, rows_nc):
    # Main block: (rows_nc, th, W).  Halo block: (rows_nc, halo_h, W) whose
    # first row is the first H-row of the NEXT H block (the "pixel below"
    # neighbour of this block's last row).
    d = x_ref[...].astype(jnp.float32) - t_ref[...].astype(jnp.float32)
    d_halo = (xh_ref[...].astype(jnp.float32)
              - th_ref[...].astype(jnp.float32))[:, :1, :]

    # dx: neighbour to the right within each W-row (lane roll on a 2-D view).
    if W > 1:
        d2 = d.reshape(rows_nc * th, W)
        d_right = pltpu.roll(d2, W - 1, 1).reshape(d.shape)
    else:
        d_right = d
    col = jax.lax.broadcasted_iota(jnp.int32, d.shape, 2)
    grow = (jax.lax.broadcasted_iota(jnp.int32, d.shape, 1)
            + pl.program_id(1) * th)                      # global H row index
    ddx = jnp.where((col < W - 1) & (grow < H), jnp.abs(d_right - d), 0.0)

    # dy: rows 1..th-1 come from this block, the last row comes from the halo.
    if th > 1:
        d_below = jnp.concatenate([d[:, 1:, :], d_halo], axis=1)
    else:
        d_below = d_halo
    ddy = jnp.where(grow < H - 1, jnp.abs(d_below - d), 0.0)

    vals = ddx + ddy
    # Ragged last NC block: mask rows beyond NC (select -> NaN-safe).
    ncrow = (jax.lax.broadcasted_iota(jnp.int32, d.shape, 0)
             + pl.program_id(0) * rows_nc)
    vals = jnp.where(ncrow < NC, vals, 0.0)

    out_ref[...] = jnp.sum(vals).reshape(1, 1, 1, 1)


# ---------------------------------------------------------------------------
# Wrapper
# ---------------------------------------------------------------------------
def _run_flat(inputs, targets, NC, H, W, itemsize, target_block_bytes, budget,
              prefer_multi_block, vmem_limit_bytes, cost):
    HW = H * W
    x = inputs.reshape(NC, HW)
    t = targets.reshape(NC, HW)

    # VMEM/step per image-channel row: 2 inputs x 2 pipeline buffers (storage
    # dtype) + ~4 f32 temporaries (d, d_right, d_below, vals).
    flat_bytes_per_row = HW * (4 * itemsize + 4 * 4)

    rows = max(1, target_block_bytes // (HW * itemsize))
    rows = min(rows, budget // flat_bytes_per_row)
    rows = max(8, (rows // 8) * 8)
    if prefer_multi_block and NC >= 16:
        # v7x: 2 TensorCores -> keep >= 2 parallel blocks so the 2nd TC works.
        rows = min(rows, _round_up(_cdiv(NC, 2), 8))
    if rows >= NC:
        rows, num_blocks = NC, 1          # single full-extent block
    else:
        num_blocks = _cdiv(NC, rows)
        # Rebalance to near-equal blocks; the ragged tail is masked in-kernel,
        # so the inputs are never padded/copied.
        rows = max(8, _round_up(_cdiv(NC, num_blocks), 8))
        num_blocks = _cdiv(NC, rows)
    needs_row_mask = (num_blocks * rows != NC)

    # Per-pixel validity masks: not-last-column (dx) / not-last-row (dy).
    pos = jnp.arange(HW, dtype=jnp.int32)
    wx = ((pos % W) != (W - 1)).astype(jnp.float32).reshape(1, HW)
    wy = (pos < (H - 1) * W).astype(jnp.float32).reshape(1, HW)

    kernel = functools.partial(
        _grad_flat_kernel,
        shift_x=(HW - 1) % HW,    # roll by -1  -> pixel to the right
        shift_y=(HW - W) % HW,    # roll by -W  -> pixel below
        nc_total=NC, rows=rows, needs_row_mask=needs_row_mask)

    return pl.pallas_call(
        kernel,
        out_shape=jax.ShapeDtypeStruct((num_blocks, 1, 1), jnp.float32),
        grid=(num_blocks,),
        in_specs=[
            pl.BlockSpec((rows, HW), lambda i: (i, 0)),
            pl.BlockSpec((rows, HW), lambda i: (i, 0)),
            pl.BlockSpec((1, HW), lambda i: (0, 0)),
            pl.BlockSpec((1, HW), lambda i: (0, 0)),
        ],
        out_specs=pl.BlockSpec((1, 1, 1), lambda i: (i, 0, 0)),
        compiler_params=pltpu.CompilerParams(
            dimension_semantics=("parallel",),
            vmem_limit_bytes=vmem_limit_bytes),
        cost_estimate=cost,
    )(x, t, wx, wy)


def _run_htiled(inputs, targets, NC, H, W, itemsize, target_block_bytes, budget,
                vmem_limit_bytes, cost):
    x = inputs.reshape(NC, H, W)
    t = targets.reshape(NC, H, W)

    halo_h = 8 if H >= 8 else H

    if H >= 8:
        th = (max(8, target_block_bytes // (W * itemsize)) // 8) * 8
        th = max(8, min(th, (H // 8) * 8))
    else:
        th = H  # full extent; halo value is never actually used (dy masked)

    def bytes_per_ncrow(t_h):
        # main: 2 inputs x 2 buffers + ~5 f32 temps; halo: 2 x 2 buffers + 1 temp
        return (t_h * W * (4 * itemsize + 5 * 4)
                + halo_h * W * (4 * itemsize + 4))

    while th > 8 and bytes_per_ncrow(th) > budget:
        th = max(8, th - 8)
    # TODO(synk): if even a (1, 8, W) block exceeds the budget (enormous W),
    # tile the W (lane) axis as well with a 1-column halo.

    rows_nc = max(1, min(target_block_bytes // max(1, th * W * itemsize),
                         budget // max(1, bytes_per_ncrow(th))))
    rows_nc = min(rows_nc, NC)

    nc_blocks = _cdiv(NC, rows_nc)
    h_blocks = _cdiv(H, th)

    if halo_h == 8:
        th_b8 = th // 8
        last_hb8 = max(0, _cdiv(H, 8) - 1)

        def halo_map(i, j):
            # 8-row block starting at the first row of the next H block
            # (clamped for the last block, whose bottom-row dy is masked).
            return (i, jnp.minimum((j + 1) * th_b8, last_hb8), 0)
    else:
        def halo_map(i, j):
            return (i, 0, 0)

    kernel = functools.partial(_grad_htiled_kernel,
                               H=H, W=W, NC=NC, th=th, rows_nc=rows_nc)

    return pl.pallas_call(
        kernel,
        out_shape=jax.ShapeDtypeStruct((nc_blocks, h_blocks, 1, 1), jnp.float32),
        grid=(nc_blocks, h_blocks),
        in_specs=[
            pl.BlockSpec((rows_nc, th, W), lambda i, j: (i, j, 0)),
            pl.BlockSpec((rows_nc, th, W), lambda i, j: (i, j, 0)),
            pl.BlockSpec((rows_nc, halo_h, W), halo_map),
            pl.BlockSpec((rows_nc, halo_h, W), halo_map),
        ],
        out_specs=pl.BlockSpec((1, 1, 1, 1), lambda i, j: (i, j, 0, 0)),
        compiler_params=pltpu.CompilerParams(
            dimension_semantics=("parallel", "parallel"),
            vmem_limit_bytes=vmem_limit_bytes),
        cost_estimate=cost,
    )(x, t, x, t)


def gradient_loss(inputs, targets, *, target_block_bytes=None,
                  vmem_limit_bytes=None, force_h_tiled=False):
    """Pallas equivalent of GradientLoss.forward(inputs, targets).

    inputs, targets: (N, C, H, W) arrays (NCHW, same as PyTorch).
    Returns a scalar float32 loss.
    """
    assert inputs.shape == targets.shape
    if inputs.ndim == 3:  # matches img_grad's unsqueeze(0) for 3-D inputs
        inputs = inputs[None]
        targets = targets[None]
    N, C, H, W = inputs.shape
    NC, HW = N * C, H * W
    itemsize = jnp.dtype(inputs.dtype).itemsize

    auto_block, auto_limit, prefer_multi_block = _tpu_budgets()
    if target_block_bytes is None:
        target_block_bytes = auto_block
    if vmem_limit_bytes is None:
        vmem_limit_bytes = auto_limit
    budget = (3 * vmem_limit_bytes) // 4   # headroom for pipeline bookkeeping

    # Advisory cost for XLA's scheduler: purely memory-bound, ~10 VPU ops/elem.
    cost = pl.CostEstimate(flops=10 * NC * HW, transcendentals=0,
                           bytes_accessed=2 * NC * HW * itemsize + 8 * HW + 1024)

    flat_bytes_per_row = HW * (4 * itemsize + 4 * 4)
    if (not force_h_tiled) and 8 * flat_bytes_per_row <= budget:
        partials = _run_flat(inputs, targets, NC, H, W, itemsize,
                             target_block_bytes, budget, prefer_multi_block,
                             vmem_limit_bytes, cost)
    else:
        partials = _run_htiled(inputs, targets, NC, H, W, itemsize,
                               target_block_bytes, budget,
                               vmem_limit_bytes, cost)

    # l1_loss means are over the FULL dx / dy tensors (N*C*H*W elements each,
    # including the zeroed boundary column / row); the two losses are averaged.
    return jnp.sum(partials) / jnp.float32(2 * N * C * H * W)


# ---------------------------------------------------------------------------
# Pure-JAX reference mirroring the PyTorch module (for verification)
# ---------------------------------------------------------------------------
def _reference_loss(inputs, targets):
    def img_grad(x):
        right = jnp.pad(x, ((0, 0), (0, 0), (0, 0), (0, 1)))[:, :, :, 1:]
        bottom = jnp.pad(x, ((0, 0), (0, 0), (0, 1), (0, 0)))[:, :, 1:, :]
        dx = right - x
        dy = bottom - x
        dx = dx.at[:, :, :, -1].set(0.0)
        dy = dy.at[:, :, -1, :].set(0.0)
        return dx, dy

    dxi, dyi = img_grad(inputs)
    dxt, dyt = img_grad(targets)
    return (jnp.mean(jnp.abs(dxi - dxt)) + jnp.mean(jnp.abs(dyi - dyt))) / 2.0


if __name__ == "__main__":
    key = jax.random.PRNGKey(0)
    k1, k2, k3, k4, k5, k6 = jax.random.split(key, 6)

    # 1) Required small shape -- flattened (lane-dense) path, single block.
    a1 = jax.random.normal(k1, (2, 4, 16, 16), dtype=jnp.float32)
    b1 = jax.random.normal(k2, (2, 4, 16, 16), dtype=jnp.float32)
    out1 = jax.block_until_ready(gradient_loss(a1, b1))
    ref1 = jax.block_until_ready(_reference_loss(a1, b1))
    assert jnp.allclose(out1, ref1, rtol=1e-5, atol=1e-6), (out1, ref1)

    # 2) Flattened path with multiple blocks + ragged (masked) last NC block.
    a2 = jax.random.normal(k3, (5, 4, 12, 16), dtype=jnp.float32)
    b2 = jax.random.normal(k4, (5, 4, 12, 16), dtype=jnp.float32)
    out2 = jax.block_until_ready(gradient_loss(a2, b2, target_block_bytes=8 * 1024))
    ref2 = jax.block_until_ready(_reference_loss(a2, b2))
    assert jnp.allclose(out2, ref2, rtol=1e-5, atol=1e-6), (out2, ref2)

    # 3) H-tiled (large-image) path: halo rows, ragged H block, ragged NC block.
    a3 = jax.random.normal(k5, (5, 2, 24, 128), dtype=jnp.float32)
    b3 = jax.random.normal(k6, (5, 2, 24, 128), dtype=jnp.float32)
    out3 = jax.block_until_ready(
        gradient_loss(a3, b3, target_block_bytes=64 * 1024, force_h_tiled=True))
    ref3 = jax.block_until_ready(_reference_loss(a3, b3))
    assert jnp.allclose(out3, ref3, rtol=1e-5, atol=1e-6), (out3, ref3)

    print("KERNEL_OK")
</pallas_src>

<mosaic_0001>
module attributes {stable_mosaic.version = 11 : i64} {
  func.func @_grad_flat_kernel(%arg0: i32, %arg1: memref<8x256xf32, #tpu.memory_space<vmem>>, %arg2: memref<8x256xf32, #tpu.memory_space<vmem>>, %arg3: memref<1x256xf32, #tpu.memory_space<vmem>>, %arg4: memref<1x256xf32, #tpu.memory_space<vmem>>, %arg5: memref<1x1x1xf32, #tpu.memory_space<vmem>>) attributes {dimension_semantics = [#tpu.dimension_semantics<parallel>], iteration_bounds = array<i64: 1>, scalar_prefetch = 0 : i64, scratch_operands = 0 : i64, tpu.core_type = #tpu.core_type<tc>, window_params = [{transform_indices = @transform_0, window_bounds = array<i64: 8, 256>}, {transform_indices = @transform_1, window_bounds = array<i64: 8, 256>}, {pipeline_mode = #tpu.pipeline_mode<synchronous>, transform_indices = @transform_2, window_bounds = array<i64: 1, 256>}, {pipeline_mode = #tpu.pipeline_mode<synchronous>, transform_indices = @transform_3, window_bounds = array<i64: 1, 256>}, {transform_indices = @transform_4, window_bounds = array<i64: 1, 1, 1>}]} {
    %c0 = arith.constant 0 : index
    %c0_0 = arith.constant 0 : index
    %0 = vector.load %arg1[%c0, %c0_0] : memref<8x256xf32, #tpu.memory_space<vmem>>, vector<8x256xf32>
    %c0_1 = arith.constant 0 : index
    %c0_2 = arith.constant 0 : index
    %1 = vector.load %arg2[%c0_1, %c0_2] : memref<8x256xf32, #tpu.memory_space<vmem>>, vector<8x256xf32>
    %2 = arith.subf %0, %1 : vector<8x256xf32>
    %c255_i32 = arith.constant 255 : i32
    %3 = tpu.dynamic_rotate %2 by %c255_i32 dim 1 : vector<8x256xf32>, i32 -> vector<8x256xf32>
    %c240_i32 = arith.constant 240 : i32
    %4 = tpu.dynamic_rotate %2 by %c240_i32 dim 1 : vector<8x256xf32>, i32 -> vector<8x256xf32>
    %5 = arith.subf %3, %2 : vector<8x256xf32>
    %6 = math.absf %5 : vector<8x256xf32>
    %c0_3 = arith.constant 0 : index
    %c0_4 = arith.constant 0 : index
    %7 = vector.load %arg3[%c0_3, %c0_4] : memref<1x256xf32, #tpu.memory_space<vmem>>, vector<1x256xf32>
    %8 = vector.broadcast %7 : vector<1x256xf32> to vector<8x256xf32>
    %9 = arith.mulf %6, %8 : vector<8x256xf32>
    %10 = arith.subf %4, %2 : vector<8x256xf32>
    %11 = math.absf %10 : vector<8x256xf32>
    %c0_5 = arith.constant 0 : index
    %c0_6 = arith.constant 0 : index
    %12 = vector.load %arg4[%c0_5, %c0_6] : memref<1x256xf32, #tpu.memory_space<vmem>>, vector<1x256xf32>
    %13 = vector.broadcast %12 : vector<1x256xf32> to vector<8x256xf32>
    %14 = arith.mulf %11, %13 : vector<8x256xf32>
    %15 = arith.addf %9, %14 : vector<8x256xf32>
    %16 = vector.shape_cast %15 : vector<8x256xf32> to vector<1x8x256xf32>
    %cst = arith.constant dense<0.000000e+00> : vector<1xf32>
    %17 = vector.multi_reduction <add>, %16, %cst [1, 2] : vector<1x8x256xf32> to vector<1xf32>
    %18 = vector.shape_cast %17 : vector<1xf32> to vector<1x1x1xf32>
    %19 = vector.extract %18[0, 0, 0] : f32 from vector<1x1x1xf32>
    %20 = vector.broadcast %19 : f32 to vector<1x1x1xf32>
    %c0_7 = arith.constant 0 : index
    %c0_8 = arith.constant 0 : index
    %c0_9 = arith.constant 0 : index
    %21 = vector.load %arg5[%c0_7, %c0_8, %c0_9] : memref<1x1x1xf32, #tpu.memory_space<vmem>>, vector<1x1x1xf32>
    tpu.vector_store %arg5[%c0_7, %c0_8, %c0_9], %20 {strides = array<i32>} : memref<1x1x1xf32, #tpu.memory_space<vmem>>, vector<1x1x1xf32>,
    return
  }
  func.func @transform_0(%arg0: i32) -> (i32, i32) {
    %c0_i32 = arith.constant 0 : i32
    %c0_i32_0 = arith.constant 0 : i32
    return %arg0, %c0_i32 : i32, i32
  }
  func.func @transform_1(%arg0: i32) -> (i32, i32) {
    %c0_i32 = arith.constant 0 : i32
    %c0_i32_0 = arith.constant 0 : i32
    return %arg0, %c0_i32 : i32, i32
  }
  func.func @transform_2(%arg0: i32) -> (i32, i32) {
    %c0_i32 = arith.constant 0 : i32
    %c0_i32_0 = arith.constant 0 : i32
    %c0_i32_1 = arith.constant 0 : i32
    return %c0_i32, %c0_i32_0 : i32, i32
  }
  func.func @transform_3(%arg0: i32) -> (i32, i32) {
    %c0_i32 = arith.constant 0 : i32
    %c0_i32_0 = arith.constant 0 : i32
    %c0_i32_1 = arith.constant 0 : i32
    return %c0_i32, %c0_i32_0 : i32, i32
  }
  func.func @transform_4(%arg0: i32) -> (i32, i32, i32) {
    %c0_i32 = arith.constant 0 : i32
    %c0_i32_0 = arith.constant 0 : i32
    %c0_i32_1 = arith.constant 0 : i32
    return %arg0, %c0_i32, %c0_i32_0 : i32, i32, i32
  }
}

</mosaic_0001>

<bundles_post_ra>
// kernel: tpu_custom_call.1
= control target key start
LH: loop header
LB: loop body
LE: loop exit
PB: predicated region body
PF: predicated region fallthrough
CT: control target
= control target key end

     0   :  { %9 = vsyncpa [#allocation3], 0  ;;  %s282_s0 = inlined_call_operand.hbm [shape: f32[8,256], index: 0, kind: input, shape index: {}]   ;;  %s283_s1 = inlined_call_operand.hbm [shape: f32[8,256], index: 1, kind: input, shape index: {}]   ;;  %s284_s2 = inlined_call_operand.vmem [shape: f32[1,256], index: 2, kind: input, shape index: {}]   ;;  %s285_s3 = inlined_call_operand.vmem [shape: f32[1,256], index: 3, kind: input, shape index: {}]   ;;  %s286_s4 = inlined_call_operand.hbm [shape: f32[1,1,1], index: 4, kind: output, shape index: {}]  }
   0x1   :  { %10 = vsyncpa [#allocation6], 0 }
   0x2   :  { %11 = vsyncpa [#allocation4], 0  ;;  %s210_s15 = smov [#allocation2]   ;;  %s211_s17 = smov [#allocation5]  }
   0x3   :  { %s18_s16 = sshll.u32 %s210_s15, 4  ;;  %s28_s18 = sshll.u32 %s211_s17, 4  ;;  %s19_s16 = int_to_ptr.vmem [resolvable:$true] %s18_s16  ;;  %s29_s18 = int_to_ptr.vmem [resolvable:$true] %s28_s18 }
   0x4   :  { %s138_s21 = scalar_lea.hbm %s282_s0, 256 }
   0x5   :  { %p139_p0 = scmp.ne.s32.totalorder %s282_s0, %s138_s21  ;;  %p142_p1 = scmp.lt.u32.totalorder %s138_s21, %s282_s0 }
   0x7   :  { %p144_p2 = pnand %p142_p1, %p139_p0 }
   0x9   :  { %147 = shalt.err (!%p144_p2)
}
   0xa   :  { %s148_s26 = scalar_lea.vmem %s19_s16, 256  ;;  %p153_p4 = scmp.lt.s32.totalorder %s19_s16, %s19_s16 }
   0xb   :  { %p149_p3 = scmp.ne.s32.totalorder %s19_s16, %s148_s26  ;;  %p154_p5 = scmp.lt.s32.totalorder %s148_s26, %s148_s26 }
   0xd   :  { %p155_p6 = por %p154_p5, %p153_p4 }
   0xf   :  { %p156_p7 = pnand %p155_p6, %p149_p3 }
  0x11   :  { %159 = shalt.err (!%p156_p7)
}
  0x12   :  { %21 = dma.hbm_to_vmem [thread:$0]  %s282_s0, 256, %s19_s16, [#allocation3]  }
  0x13   :  { %s160_s5 = scalar_lea.hbm %s283_s1, 256 }
  0x14   :  { %p161_p8 = scmp.ne.s32.totalorder %s283_s1, %s160_s5  ;;  %p164_p9 = scmp.lt.u32.totalorder %s160_s5, %s283_s1 }
  0x16   :  { %p166_p10 = pnand %p164_p9, %p161_p8 }
  0x18   :  { %169 = shalt.err (!%p166_p10)
}
  0x19   :  { %s170_s10 = scalar_lea.vmem %s29_s18, 256  ;;  %p175_p12 = scmp.lt.s32.totalorder %s29_s18, %s29_s18 }
  0x1a   :  { %p171_p11 = scmp.ne.s32.totalorder %s29_s18, %s170_s10  ;;  %p176_p13 = scmp.lt.s32.totalorder %s170_s10, %s170_s10 }
  0x1c   :  { %p177_p0 = por %p176_p13, %p175_p12 }
  0x1e   :  { %p178_p1 = pnand %p177_p0, %p171_p11 }
  0x20   :  { %181 = shalt.err (!%p178_p1)
}
  0x21   :  { %31 = dma.hbm_to_vmem [thread:$0]  %s283_s1, 256, %s29_s18, [#allocation6]  }
  0x22   :  { %204 = dma.done.wait [#allocation3], 256  }
  0x23   :  { %205 = vsyncadd [#allocation3], 4294967040 }
  0x24   :  { %206 = dma.done.wait [#allocation6], 256  }
  0x25   :  { %207 = vsyncadd [#allocation6], 4294967040  ;;  %v42_v0 = vld [vmem:[#allocation2] sm:$0xff]  ;;  %v44_v1 = vld [vmem:[#allocation5] sm:$0xff]  ;;  %s212_s12 = smov 112   ;;  %s213_s13 = smov 127   ;;  %v52_v6 = vlaneseq }
  0x26   :  { %v43_v2 = vld [vmem:[#allocation2 + $0x8] sm:$0xff]  ;;  %v46_v3 = vsub.f32 %v42_v0, %v44_v1  ;;  %v45_v4 = vld [vmem:[#allocation5 + $0x8] sm:$0xff]  ;;  %v86_v13 = vld [vmem:[%s285_s3] sm:$0x3]  ;;  %vm113_vm2 = vcmask 0  }
  0x27   :  { %v47_v5 = vsub.f32 %v43_v2, %v45_v4  ;;  %v71_v7 = vshrl.u32 %v52_v6, 7  ;;  %v53_v8 = vand.u32 127, %v52_v6  ;;  %v68_v14 = vld [vmem:[%s284_s2] sm:$0x3]  ;;  %s214_s2 = smov [#allocation7]  }
  0x28   :  { %57 = vrot.lane.b32.xlu1 %v46_v3, %s212_s12  ;;  %48 = vrot.lane.b32.xlu0 %v46_v3, %s213_s13  ;;  %s121_s3 = sshll.u32 %s214_s2, 4  ;;  %s122_s3 = int_to_ptr.vmem [resolvable:$true] %s121_s3 }
  0x29   :  { %v72_v11 = vsub.s32 0, %v71_v7  ;;  %v76_v12 = vsub.s32 1, %v71_v7  ;;  %vm61_vm0 = vcmp.lt.s32.totalorder %v53_v8, 112  ;;  %vm54_vm1 = vcmp.lt.s32.totalorder %v53_v8, 127  ;;  %s182_s18 = scalar_lea.vmem %s122_s3, 16  ;;  %s186_s19 = scalar_lea.vmem %s122_s3, 32 }
  0x2a   :  { %p183_p2 = scmp.ne.s32.totalorder %s122_s3, %s182_s18  ;;  %p187_p3 = scmp.lt.s32.totalorder %s122_s3, %s122_s3 }
  0x2b   :  { %v91_v15 = vrot.slane %v86_v13, %v72_v11  ;;  %v95_v16 = vrot.slane %v86_v13, %v76_v12  ;;  %v73_v18 = vrot.slane %v68_v14, %v72_v11  ;;  %v77_v28 = vrot.slane %v68_v14, %v76_v12  ;;  %p188_p4 = scmp.lt.s32.totalorder %s186_s19, %s182_s18 }
  0x2c   :  { %59 = vrot.lane.b32.xlu1 %v47_v5, %s212_s12  ;;  %50 = vrot.lane.b32.xlu0 %v47_v5, %s213_s13 }
  0x2d   :  { %p189_p5 = por %p188_p4, %p187_p3 }
  0x2f   :  { %p190_p6 = pnand %p189_p5, %p183_p2 }
  0x9a   :  { %v58_v9 = vpop.permute.xlu1 %57  ;;  %v49_v10 = vpop.permute.xlu0 %48 }
  0x9e   :  { %v60_v17 = vpop.permute.xlu1 %59  ;;  %v51_v19 = vpop.permute.xlu0 %50 }
  0x9f   :  { %v62_v20 = vsel %vm61_vm0, %v58_v9, %v60_v17  ;;  %v63_v21 = vsel %vm61_vm0, %v60_v17, %v58_v9  ;;  %v55_v22 = vsel %vm54_vm1, %v49_v10, %v51_v19  ;;  %v56_v23 = vsel %vm54_vm1, %v51_v19, %v49_v10 }
  0xa0   :  { %v82_v24 = vsub.f32 %v62_v20, %v46_v3  ;;  %v83_v25 = vsub.f32 %v63_v21, %v47_v5  ;;  %v64_v26 = vsub.f32 %v55_v22, %v46_v3  ;;  %v65_v27 = vsub.f32 %v56_v23, %v47_v5 }
  0xa2   :  { %v84_v29 = vand.u32 2147483647, %v82_v24  ;;  %v85_v30 = vand.u32 2147483647, %v83_v25  ;;  %v66_v31 = vand.u32 2147483647, %v64_v26 }
  0xa3   :  { %v67_v32 = vand.u32 2147483647, %v65_v27 }
  0xa4   :  { %v98_v33 = vmul.f32 %v91_v15, %v84_v29  ;;  %v99_v34 = vmul.f32 %v95_v16, %v85_v30  ;;  %v80_v35 = vmul.f32 %v73_v18, %v66_v31 }
  0xa5   :  { %v81_v36 = vmul.f32 %v77_v28, %v67_v32 }
  0xa6   :  { %v100_v37 = vadd.f32 %v98_v33, %v80_v35 }
  0xa7   :  { %v101_v38 = vadd.f32 %v99_v34, %v81_v36 }
  0xa9   :  { %v102_v39 = vadd.f32 %v101_v38, %v100_v37 }
  0xab   :  { %103 = vadd.xlane.f32.xlu0 %v102_v39 }
 0x138   :  { %v104_v40 = vpop.xlane.xlu0 %103 }
 0x139   :  { %v105_v41 = vrot.slane %v104_v40, 4 }
 0x13b   :  { %v106_v42 = vadd.f32 %v105_v41, %v104_v40 }
 0x13d   :  { %v107_v43 = vrot.slane %v106_v42, 2 }
 0x13f   :  { %v108_v44 = vadd.f32 %v107_v43, %v106_v42 }
 0x141   :  { %v109_v45 = vrot.slane %v108_v44, 1 }
 0x143   :  { %v110_v46 = vadd.f32 %v109_v45, %v108_v44 }
 0x145   :  { %131 = vpush %v110_v46 }
 0x176   :  { %s132_s17 = spop %131 }
 0x177   :  { %v112_v47 = vstv %s132_s17 }
 0x178   :  { %114 = vst.msk [vmem:[#allocation7] sm:$0x1] %vm113_vm2, %v112_v47 }
 0x179   :  { %193 = shalt.err (!%p190_p6)
}
 0x17a   :  { %s194_s22 = scalar_lea.hbm %s286_s4, 16 }
 0x17b   :  { %p195_p7 = scmp.ne.s32.totalorder %s286_s4, %s194_s22  ;;  %p198_p8 = scmp.lt.u32.totalorder %s194_s22, %s286_s4 }
 0x17d   :  { %p200_p9 = pnand %p198_p8, %p195_p7 }
 0x17f   :  { %203 = shalt.err (!%p200_p9)
}
 0x180   :  { %124 = dma.vmem_to_hbm [thread:$0]  %s122_s3, 16, %s286_s4, [#allocation4]  }
 0x181   :  { %208 = dma.done.wait [#allocation4], 16  }
 0x182   :  { %209 = vsyncadd [#allocation4], 4294967280 }
 0x183   :  { %128 = vsyncpa [#allocation3], 1 }
 0x184   :  { %129 = vsyncpa [#allocation6], 1 }
 0x185   :  { %130 = vsyncpa [#allocation4], 1 }

</bundles_post_ra>
